<compile_context>
chip_gen: v6e
topology: v6e:2x2x1
jax: 0.10.0
libtpu: 0.0.40
codegen_flags: <defaults>
</compile_context>

<pallas_src>
import functools

import jax
import jax.numpy as jnp
from jax.experimental import pallas as pl
from jax.experimental.pallas import tpu as pltpu


_LANE = 128
_MIN_GRID_STEPS = 8          # keep the pipeline / both v7x TCs fed
_TINY_SPATIAL = 128          # below this, plain jnp beats any kernel launch


def _round_up(v, m):
    return ((v + m - 1) // m) * m


def _vmem_budgets():
    """(budget for the 4 in/out buffers, vmem_limit_bytes) per generation."""
    try:
        vmem_cap = pltpu.get_tpu_info().vmem_capacity_bytes
    except Exception:  # pragma: no cover - conservative fallback
        vmem_cap = 64 * 1024 * 1024
    if vmem_cap >= 96 * 1024 * 1024:          # v5e / v6e: 128 MiB physical
        return 48 * 1024 * 1024, 64 * 1024 * 1024
    # v7x: 64 MiB per TC, 32 MiB default scoped limit.
    return 24 * 1024 * 1024, 32 * 1024 * 1024


def _choose_spatial_tile(n, s, c, dtype_bytes, buffer_budget):
    """Pick a lane-dense spatial tile (columns of the flattened H*W axis).

    Constraint: 2 arrays (in + out) x 2 double-buffers x (c * tile * bytes)
    must fit in `buffer_budget`.  Tile is a multiple of 128; the wrapper pads
    the spatial axis up to a multiple of the tile, so no masked tail blocks.
    """
    # Largest tile the VMEM budget allows.
    max_cols = buffer_budget // (4 * c * dtype_bytes)
    max_cols = max(_LANE, (max_cols // _LANE) * _LANE)

    tile = min(_round_up(s, _LANE), max_cols)

    # Keep enough grid steps to hide DMA latency / feed both v7x TCs: shrink
    # the tile (not below 128) rather than collapsing to 1-2 blocks.
    blocks_per_batch_wanted = max(1, -(-_MIN_GRID_STEPS // n))   # ceil div
    tile_for_steps = _round_up(max(1, -(-s // blocks_per_batch_wanted)), _LANE)
    tile = max(_LANE, min(tile, tile_for_steps))
    return tile


def _pixelwise_norm_kernel(x_ref, o_ref, *, sigma):
    # Block view: (C, TILE) -- batch dim squeezed.  Channel reduce is axis 0.
    x = x_ref[...].astype(jnp.float32)
    inv = jax.lax.rsqrt(jnp.mean(x * x, axis=0, keepdims=True) + sigma)
    o_ref[...] = (x * inv).astype(o_ref.dtype)


def _pixelwise_norm_ref(x, sigma):
    xf = x.astype(jnp.float32)
    inv = jax.lax.rsqrt(jnp.mean(xf * xf, axis=1, keepdims=True) + sigma)
    return (xf * inv).astype(x.dtype)


def pixelwise_norm(x, sigma=1e-8):
    """x: (N, C, H, W) -> x / sqrt(mean(x^2, dim=1, keepdim=True) + sigma)."""
    n, c, h, w = x.shape
    s = h * w
    sigma = float(sigma)

    # Tiny feature maps: launch overhead + masked stores dominate; let XLA
    # fuse it.
    if s < _TINY_SPATIAL:
        return _pixelwise_norm_ref(x, sigma)

    dtype_bytes = jnp.dtype(x.dtype).itemsize
    buffer_budget, vmem_limit = _vmem_budgets()
    tile = _choose_spatial_tile(n, s, c, dtype_bytes, buffer_budget)

    blocks = -(-s // tile)                 # ceil
    s_pad = blocks * tile
    grid = (n, blocks)

    x_flat = x.reshape(n, c, s)
    if s_pad != s:
        # Zero padding is harmless: the reduction is over C, per pixel, and
        # sigma > 0 keeps rsqrt finite.  Padded columns are sliced off below.
        x_flat = jnp.pad(x_flat, ((0, 0), (0, 0), (0, s_pad - s)))

    kernel = functools.partial(_pixelwise_norm_kernel, sigma=sigma)

    # None squeezes the size-1 batch dim out of the kernel Ref -> (C, tile).
    blk = (None, c, tile)
    idx = lambda i, j: (i, 0, j)

    out_flat = pl.pallas_call(
        kernel,
        out_shape=jax.ShapeDtypeStruct((n, c, s_pad), x.dtype),
        grid_spec=pl.GridSpec(
            grid=grid,
            in_specs=[pl.BlockSpec(blk, idx)],
            out_specs=pl.BlockSpec(blk, idx),
        ),
        compiler_params=pltpu.CompilerParams(
            dimension_semantics=("parallel", "parallel"),
            vmem_limit_bytes=vmem_limit,
        ),
        cost_estimate=pl.CostEstimate(
            flops=3 * n * c * s_pad,
            transcendentals=n * s_pad,
            bytes_accessed=2 * n * c * s_pad * dtype_bytes,
        ),
    )(x_flat)

    if s_pad != s:
        out_flat = out_flat[:, :, :s]
    return out_flat.reshape(n, c, h, w)


if __name__ == "__main__":
    key = jax.random.PRNGKey(0)

    # Matches the module's usage (rand * 10000), NCHW, small shapes.
    x = jax.random.uniform(key, (2, 4, 16, 16), dtype=jnp.float32) * 10000.0
    out = jax.block_until_ready(pixelwise_norm(x, sigma=1e-8))
    ref = x / jnp.sqrt(jnp.mean(x * x, axis=1, keepdims=True) + 1e-8)
    assert out.shape == x.shape and out.dtype == x.dtype
    assert jnp.allclose(out, ref, rtol=1e-5, atol=1e-5)

    # Non-128-multiple spatial path that is still big enough for Pallas
    # (pads 40*40=1600 -> multiple of 128, then slices back).
    x1 = jax.random.uniform(jax.random.PRNGKey(2), (2, 4, 40, 40),
                            dtype=jnp.float32) * 10000.0
    out1 = jax.block_until_ready(pixelwise_norm(x1, sigma=1e-8))
    ref1 = x1 / jnp.sqrt(jnp.mean(x1 * x1, axis=1, keepdims=True) + 1e-8)
    assert jnp.allclose(out1, ref1, rtol=1e-5, atol=1e-5)

    # Original spec shape (tiny spatial) -> plain-jnp fast path.
    x2 = jax.random.uniform(jax.random.PRNGKey(1), (2, 3, 5, 5),
                            dtype=jnp.float32) * 10000.0
    out2 = jax.block_until_ready(pixelwise_norm(x2, sigma=1e-8))
    ref2 = x2 / jnp.sqrt(jnp.mean(x2 * x2, axis=1, keepdims=True) + 1e-8)
    assert jnp.allclose(out2, ref2, rtol=1e-5, atol=1e-5)

    print("KERNEL_OK")
</pallas_src>

<mosaic_0001>
module attributes {stable_mosaic.version = 11 : i64} {
  func.func @_pixelwise_norm_kernel(%arg0: i32, %arg1: i32, %arg2: memref<1x4x128xf32, #tpu.memory_space<vmem>>, %arg3: memref<1x4x128xf32, #tpu.memory_space<vmem>>) attributes {dimension_semantics = [#tpu.dimension_semantics<parallel>, #tpu.dimension_semantics<parallel>], iteration_bounds = array<i64: 2, 2>, scalar_prefetch = 0 : i64, scratch_operands = 0 : i64, tpu.core_type = #tpu.core_type<tc>, window_params = [{transform_indices = @transform_0, window_bounds = array<i64: 1, 4, 128>}, {transform_indices = @transform_1, window_bounds = array<i64: 1, 4, 128>}]} {
    %c0 = arith.constant 0 : index
    %c0_0 = arith.constant 0 : index
    %c0_1 = arith.constant 0 : index
    %0 = vector.load %arg2[%c0, %c0_0, %c0_1] : memref<1x4x128xf32, #tpu.memory_space<vmem>>, vector<1x4x128xf32>
    %1 = vector.shape_cast %0 : vector<1x4x128xf32> to vector<4x128xf32>
    %2 = arith.mulf %1, %1 : vector<4x128xf32>
    %cst = arith.constant dense<0.000000e+00> : vector<128xf32>
    %3 = vector.multi_reduction <add>, %2, %cst [0] : vector<4x128xf32> to vector<128xf32>
    %4 = vector.shape_cast %3 : vector<128xf32> to vector<1x128xf32>
    %cst_2 = arith.constant 4.000000e+00 : f32
    %5 = vector.broadcast %cst_2 : f32 to vector<1x128xf32>
    %6 = arith.divf %4, %5 : vector<1x128xf32>
    %cst_3 = arith.constant 9.99999993E-9 : f32
    %7 = vector.broadcast %cst_3 : f32 to vector<1x128xf32>
    %8 = arith.addf %6, %7 : vector<1x128xf32>
    %9 = math.rsqrt %8 : vector<1x128xf32>
    %10 = vector.broadcast %9 : vector<1x128xf32> to vector<4x128xf32>
    %11 = arith.mulf %1, %10 : vector<4x128xf32>
    %c0_4 = arith.constant 0 : index
    %c0_5 = arith.constant 0 : index
    %c0_6 = arith.constant 0 : index
    %12 = vector.load %arg3[%c0_4, %c0_5, %c0_6] : memref<1x4x128xf32, #tpu.memory_space<vmem>>, vector<1x4x128xf32>
    %13 = vector.shape_cast %12 : vector<1x4x128xf32> to vector<4x128xf32>
    %14 = vector.shape_cast %11 : vector<4x128xf32> to vector<1x4x128xf32>
    tpu.vector_store %arg3[%c0_4, %c0_5, %c0_6], %14 {strides = array<i32>} : memref<1x4x128xf32, #tpu.memory_space<vmem>>, vector<1x4x128xf32>,
    return
  }
  func.func @transform_0(%arg0: i32, %arg1: i32) -> (i32, i32, i32) {
    %c0_i32 = arith.constant 0 : i32
    %c0_i32_0 = arith.constant 0 : i32
    return %arg0, %c0_i32, %arg1 : i32, i32, i32
  }
  func.func @transform_1(%arg0: i32, %arg1: i32) -> (i32, i32, i32) {
    %c0_i32 = arith.constant 0 : i32
    %c0_i32_0 = arith.constant 0 : i32
    return %arg0, %c0_i32, %arg1 : i32, i32, i32
  }
}

</mosaic_0001>

<bundles_post_ra>
// kernel: tpu_custom_call.1
= control target key start
LH: loop header
LB: loop body
LE: loop exit
PB: predicated region body
PF: predicated region fallthrough
CT: control target
= control target key end

     0   :  { %6 = vsyncpa [#allocation3], 0  ;;  %s656_s0 = inlined_call_operand.hbm [shape: f32[2,4,256], index: 0, kind: input, shape index: {}]   ;;  %s657_s1 = inlined_call_operand.hbm [shape: f32[2,4,256], index: 1, kind: output, shape index: {}]  }
   0x1   :  { %8 = vsyncpa [#allocation3 + $0x1], 0 }
   0x2   :  { %9 = vsyncpa [#allocation4], 0 }
   0x3   :  { %11 = vsyncpa [#allocation4 + $0x1], 0  ;;  %s500_s6 = smov 0   ;;  %s502_s7 = smov 0  }
   0x4   :  { %s504_s8 = smov 0   ;;  %s506_s9 = smov 0  }
   0x5   :  { %s508_s10 = smov 0   ;;  %s510_s11 = smov 0  }
   0x6   :  { %s512_s12 = smov 0   ;;  %s514_s13 = smov 0  }
   0x7 LB: > { %s267_s14 = sadd.s32 4294967295, %s486_s13   ;;  %s268_s15 = sadd.s32 4294967294, %s486_s13   ;;  %s486_s13 = sphi %s514_s13, %s17_s13   ;;  %s482_s12 = sphi %s512_s12, %s670_s12   ;;  %s478_s11 = sphi %s510_s11, %s669_s11   ;;  %s474_s10 = sphi %s508_s10, %s668_s10   ;;  %s470_s9 = sphi %s506_s9, %s667_s9   ;;  %s466_s8 = sphi %s504_s8, %s666_s8   ;;  %s462_s7 = sphi %s502_s7, %s665_s7   ;;  %s458_s6 = sphi %s500_s6, %s664_s6  }
   0x8   : > { %s26_s16 = sadd.s32 1, %s478_s11  ;;  %s29_s17 = sadd.s32 1, %s482_s12 }
   0x9   : > { %p27_p0 = scmp.ge.s32.totalorder %s26_s16, 2  ;;  %s38_s18 = sadd.s32 1, %s466_s8 }
   0xa   : > { %p45_p1 = scmp.ne.s32.totalorder %s466_s8, %s462_s7  ;;  %p46_p2 = scmp.eq.s32.totalorder %s486_s13, 0 }
   0xb   : > { %s672_s16 = smov (%p27_p0, %s26_s16), 0  ;;  %s674_s17 = smov (!%p27_p0, %s29_s17), %s482_s12 }
   0xc   : > { %s34_s19 = ssub.s32 %s478_s11, %s672_s16  ;;  %p553_p3 = por %p46_p2, %p45_p1 }
   0xd   : > { %p31_p4 = scmp.ge.s32.totalorder %s674_s17, 2  ;;  %p51_p5 = scmp.ne.s32.totalorder %s462_s7, %s458_s6 }
   0xe   : > { %p52_p6 = scmp.eq.s32.totalorder %s267_s14, 0  ;;  %p77_p7 = scmp.eq.s32.totalorder %s267_s14, 3 }
   0xf   : > { %s676_s17 = smov (%p31_p4, %s674_s17), 0  ;;  %p83_p10 = scmp.eq.s32.totalorder %s268_s15, 3 }
  0x10   : > { %p561_p8 = por %p52_p6, %p51_p5  ;;  %p565_p9 = por %p77_p7, %p45_p1 }
  0x11   : > { %s33_s23 = ssub.s32 %s482_s12, %s676_s17  ;;  %p571_p12 = por %p83_p10, %p51_p5 }
  0x12   : > { %s35_s24 = sor.u32 %s34_s19, %s33_s23  ;;  %p294_p13 = scmp.lt.s32.totalorder %s486_s13, 4 }
  0x13   : > { %p36_p11 = scmp.eq.s32.totalorder %s35_s24, 0  ;;  %s103_s26 = sand.u32 1, %s466_s8  }
  0x14   : > { %s661_s25 = scalar_select %p571_p12, 1, 0 }
  0x15   : > { %s578_s27 = scalar_select %p36_p11, %s466_s8, %s38_s18  }
  0x16   : > { %s271_s28 = sshll.u32 %s103_s26, 2  ;;  %s272_s29 = sshll.u32 %s482_s12, 1 }
  0x17   : > { %s112_s30 = sadd.s32 %s478_s11, %s272_s29  ;;  %s107_s2 = scalar_lea.vmem [#allocation2], %s271_s28 }
  0x18   : > { %s116_s3 = sshll.u32 %s107_s2, 4  ;;  %s273_s4 = sshll.u32 %s112_s30, 6  ;;  %s117_s3 = int_to_ptr.vmem [resolvable:$true] %s116_s3 }
  0x19   : > { %s114_s15 = scalar_lea.hbm %s656_s0, %s273_s4  ;;  %p587_p0 = pnand %p294_p13, %p553_p3 }
  0x1a   : > { %p274_p1 = scmp.ge.s32.totalorder %s486_s13, 1  ;;  %p121_p2 = scmp.lt.s32.totalorder %s486_s13, 5 }
  0x1b   : > { %s104_s18 = scalar_lea.sflag [#allocation3], %s103_s26  ;;  %p364_p4 = pneg %p587_p0 }
  0x1c   : > { %s375_s23 = scalar_lea.vmem %s117_s3, 64  ;;  %s488_s24 = smov [#allocation2]  }
  0x1d   : > { %p376_p5 = scmp.ne.s32.totalorder %s117_s3, %s375_s23  ;;  %s380_s28 = sshll.u32 %s488_s24, 4  ;;  %s381_s28 = int_to_ptr.vmem [resolvable:$false] %s380_s28 }
  0x1e   : > { %s382_s29 = scalar_lea.vmem %s381_s28, 128  ;;  %p383_p10 = scmp.lt.s32.totalorder %s117_s3, %s381_s28 }
  0x1f   : > { %p378_p6 = pnand %p376_p5, %p364_p4  ;;  %p384_p11 = scmp.lt.s32.totalorder %s382_s29, %s375_s23 }
  0x21   : > { %p379_p7 = pneg %p378_p6  ;;  %p385_p3 = por %p384_p11, %p383_p10 }
  0x23   : > { %p386_p13 = pnand %p385_p3, %p379_p7 }
  0x25   : > { %389 = shalt.err (!%p386_p13)
}
  0x26   : > { %289 = dma.hbm_to_vmem [thread:$0]  (!%p587_p0), %s114_s15, 64, %s117_s3, %s104_s18  }
  0x27   : > { %p122_p12 = pnand %p274_p1, %p121_p2 }
  0x28   : > { %s602_s20 = sand.u32 (!%p122_p12), 1, %s462_s7  }
  0x29   : > { %125 = sbr.rel (%p122_p12) target bundleno = 96 (0x60), region = 24  ;;  %s275_s26 = sshll.u32 (!%p122_p12), %s602_s20, 2 }
  0x2a   : > { %s128_s30 = scalar_lea.sflag (!%p122_p12), [#allocation3], %s602_s20  ;;  %s131_s2 = scalar_lea.vmem (!%p122_p12), [#allocation2], %s275_s26 }
  0x2e   : > { %449 = dma.done.wait (%p561_p8), %s128_s30, 64  }
  0x2f   : > { %451 = vsyncadd (%p561_p8), %s128_s30, 4294967232  ;;  %v150_v0 = vld [vmem:[%s131_s2] sm:$0xf]  ;;  %vm152_vm0 = vcmask 1043456   ;;  %s278_s3 = sshll.u32 %s474_s10, 1  ;;  %s149_s4 = scalar_lea.vmem [#allocation5], %s275_s26 }
  0x30   : > { %v151_v1 = vmul.f32 %v150_v0, %v150_v0  ;;  %s178_s21 = sadd.s32 %s470_s9, %s278_s3  ;;  %s182_s5 = sshll.u32 %s149_s4, 4  ;;  %s183_s5 = int_to_ptr.vmem [resolvable:$true] %s182_s5 }
  0x31   : > { %s279_s14 = sshll.u32 %s178_s21, 6  ;;  %s167_s23 = scalar_lea.sflag [#allocation4], %s602_s20 }
  0x32   : > { %v153_v2 = vsel %vm152_vm0, %v151_v1, 0.0  ;;  %s180_s18 = scalar_lea.hbm %s657_s1, %s279_s14  ;;  %s390_s24 = scalar_lea.vmem %s183_s5, 64 }
  0x33   : > { %v154_v3 = vrot.slane %v153_v2, 4  ;;  %p391_p8 = scmp.ne.s32.totalorder %s183_s5, %s390_s24  ;;  %s489_s28 = smov [#allocation5]  }
  0x34   : > { %s394_s10 = sshll.u32 %s489_s28, 4  ;;  %s395_s10 = int_to_ptr.vmem [resolvable:$false] %s394_s10 }
  0x35   : > { %v155_v4 = vadd.f32 %v154_v3, %v153_v2  ;;  %p392_p12 = pnand %p391_p8, %p565_p9  ;;  %s396_s9 = scalar_lea.vmem %s395_s10, 128 }
  0x36   : > { %p397_p1 = scmp.lt.s32.totalorder %s183_s5, %s395_s10  ;;  %p398_p2 = scmp.lt.s32.totalorder %s396_s9, %s390_s24 }
  0x37   : > { %v156_v5 = vrot.slane %v155_v4, 2  ;;  %p393_p0 = pneg %p392_p12 }
  0x38   : > { %p399_p4 = por %p398_p2, %p397_p1 }
  0x39   : > { %v157_v6 = vadd.f32 %v156_v5, %v155_v4 }
  0x3a   : > { %p400_p5 = pnand %p399_p4, %p393_p0 }
  0x3b   : > { %v158_v7 = vrot.slane %v157_v6, 1 }
  0x3d   : > { %v159_v8 = vadd.f32 %v158_v7, %v157_v6 }
  0x3f   : > { %v161_v9 = vmul.f32 0.25, %v159_v8 }
  0x41   : > { %v162_v10 = vadd.f32 1e-08, %v161_v9 }
  0x43   : > { %360 = vrsqrt.f32 %v162_v10 }
  0x50   : > { %v361_v11 = vpop.eup %360 }
  0x51   : > { %v164_v12 = vmul.f32 %v361_v11, %v150_v0 }
  0x53   : > { %165 = vst [vmem:[%s149_s4] sm:$0xf] %v164_v12 }
  0x54   : > { %403 = shalt.err (!%p400_p5)
}
  0x55   : > { %s404_s29 = scalar_lea.hbm %s180_s18, 64  ;;  %s408_s30 = scalar_lea.hbm %s657_s1, 256 }
  0x56   : > { %p405_p6 = scmp.ne.s32.totalorder %s180_s18, %s404_s29  ;;  %p409_p11 = scmp.lt.s32.totalorder %s180_s18, %s657_s1 }
  0x57   : > { %p410_p3 = scmp.lt.s32.totalorder %s408_s30, %s404_s29 }
  0x58   : > { %p406_p7 = pnand %p405_p6, %p565_p9 }
  0x59   : > { %p411_p13 = por %p410_p3, %p409_p11 }
  0x5a   : > { %p407_p10 = pneg %p406_p7 }
  0x5c   : > { %p412_p8 = pnand %p411_p13, %p407_p10 }
  0x5e   : > { %415 = shalt.err (!%p412_p8)
}
  0x5f   : > { %284 = dma.vmem_to_hbm [thread:$0]  (%p565_p9), %s183_s5, 64, %s180_s18, %s167_s23  }
  0x60 PF: > { %p295_p12 = scmp.ge.s32.totalorder %s486_s13, 2  ;;  %s194_s21 = sand.u32 1, %s458_s6  }
  0x61   : > { %p663_p0 = scmp.ne.s32.totalorder %s661_s25, 0  ;;  %s195_s4 = scalar_lea.sflag [#allocation4], %s194_s21 }
  0x63   : > { %p291_p1 = pnand %p295_p12, %p663_p0 }
  0x65   : > { %p292_p2 = pneg %p291_p1 }
  0x67   : > { %453 = dma.done.wait (%p292_p2), %s195_s4, 64  }
  0x68   : > { %455 = vsyncadd (%p292_p2), %s195_s4, 4294967232  ;;  %s17_s13 = sadd.s32 1, %s486_s13   ;;  %s664_s6 = smov %s462_s7 }
  0x69   : > { %p14_p4 = scmp.ge.s32.totalorder %s17_s13, 6   ;;  %s665_s7 = smov %s466_s8 }
  0x6a   : > { %s666_s8 = smov %s578_s27  ;;  %s667_s9 = smov %s478_s11 }
  0x6b   : > { %s668_s10 = smov %s482_s12  ;;  %s669_s11 = smov %s672_s16 }
  0x6c   : > { %s670_s12 = smov %s676_s17  ;;  %16 = sbr.rel (!%p14_p4) target bundleno = 7 (0x7), region = 69 }
  0x71   :  { %200 = vsyncpa [#allocation3], 1 }
  0x72   :  { %202 = vsyncpa [#allocation3 + $0x1], 1 }
  0x73   :  { %203 = vsyncpa [#allocation4], 1 }
  0x74   :  { %205 = vsyncpa [#allocation4 + $0x1], 1 }

</bundles_post_ra>
